<compile_context>
chip_gen: v7x
topology: tpu7x:2x2x1
jax: 0.10.0
libtpu: 0.0.40
codegen_flags: <defaults>
</compile_context>

<pallas_src>
import functools

import jax
import jax.numpy as jnp
from jax.experimental import pallas as pl
from jax.experimental.pallas import tpu as pltpu


# --------------------------------------------------------------------------- #
# Kernel: streaming log-sum-exp over class tiles, per-row output.
# --------------------------------------------------------------------------- #
def _lse_kernel(logits_ref, lse_ref, m_ref, l_ref, *, n_cls, tc):
    j = pl.program_id(1)            # class-tile index ("arbitrary", reduction)
    nj = pl.num_programs(1)

    @pl.when(j == 0)
    def _init():
        m_ref[...] = jnp.full_like(m_ref, -jnp.inf)
        l_ref[...] = jnp.zeros_like(l_ref)

    # Load in native dtype (bf16 ok); max / masking stay in native dtype
    # (packed bf16 VALU on v6e/v7x), exp + accumulation run in f32.
    x = logits_ref[...]                                     # (tn, tc)

    if n_cls % tc != 0:
        # Only emitted when the last class tile is partial: mask padded lanes
        # to -inf so they cannot corrupt max / sum-exp.  (1, tc) iota broadcasts
        # against the (tn, tc) tile.
        cls = j * tc + jax.lax.broadcasted_iota(jnp.int32, (1, tc), 1)
        x = jnp.where(cls < n_cls, x, -jnp.inf)

    tile_max = jnp.max(x, axis=-1, keepdims=True).astype(jnp.float32)  # (tn, 1)
    m_prev = m_ref[...]
    m_new = jnp.maximum(m_prev, tile_max)
    alpha = jnp.exp(m_prev - m_new)
    # Guard the -inf/-inf edge case (e.g. user-masked vocab rows): exp(nan)->0.
    alpha = jnp.where(m_new == -jnp.inf, 0.0, alpha)

    p = jnp.exp(x.astype(jnp.float32) - m_new)              # (tn, tc) f32
    l_ref[...] = alpha * l_ref[...] + jnp.sum(p, axis=-1, keepdims=True)
    m_ref[...] = m_new

    @pl.when(j == nj - 1)
    def _finalize():
        lse_ref[...] = m_ref[...] + jnp.log(l_ref[...])     # (tn, 1) f32


# --------------------------------------------------------------------------- #
# Tile selection helpers.
# --------------------------------------------------------------------------- #
def _round_up(x, m):
    return (x + m - 1) // m * m


def _pick_row_tile(n):
    if n < 16:
        return n                       # single tiny tile (block == full dim)
    # Aim for >= 2 row tiles (both v7x TensorCores via the "parallel" axis);
    # multiple of 8 for sublane tiling; cap at 256 rows.
    return min(256, _round_up(pl.cdiv(n, 2), 8))


def _pick_class_tile(c, cap=4096):
    if c <= cap:
        return c                       # single full-width class tile, no mask
    # Prefer a multiple of 128 that divides C (drops the in-kernel pad mask).
    for cand in range(cap, 1023, -128):
        if c % cand == 0:
            return cand
    return cap                         # fall back: partial last tile + mask


# --------------------------------------------------------------------------- #
# Wrapper: mean cross entropy = mean(lse(logits) - logits[labels]).
# --------------------------------------------------------------------------- #
def cross_entropy(logits: jax.Array, labels: jax.Array,
                  *, tn: int | None = None, tc: int | None = None) -> jax.Array:
    """Equivalent of F.cross_entropy(logits, labels) with mean reduction.

    logits: (N, C) float (any float dtype; LSE math runs in f32 in-kernel),
    labels: (N,) int.  Returns a scalar float32.
    """
    n, c = logits.shape

    if tn is None:
        tn = _pick_row_tile(n)
    if tc is None:
        tc = _pick_class_tile(c)
    assert tn == n or tn % 8 == 0, "row tile must be full N or a multiple of 8"
    assert tc == c or (tc % 128 == 0 and tc <= c), \
        "class tile must be full C or a multiple of 128 (<= C)"

    grid = (pl.cdiv(n, tn), pl.cdiv(c, tc))

    kernel = functools.partial(_lse_kernel, n_cls=c, tc=tc)

    # 48 MiB scoped VMEM: above v5e's 16 MiB default (needed for 256x4096 tiles
    # + f32 temporaries), within v7x's 64 MiB physical VMEM per TensorCore.
    vmem_limit = 48 * 1024 * 1024

    lse_padded = pl.pallas_call(
        kernel,
        out_shape=jax.ShapeDtypeStruct((grid[0] * tn, 1), jnp.float32),
        grid_spec=pltpu.PrefetchScalarGridSpec(
            num_scalar_prefetch=0,
            grid=grid,
            in_specs=[
                pl.BlockSpec((tn, tc), lambda i, j: (i, j)),   # logits, native dtype
            ],
            out_specs=pl.BlockSpec((tn, 1), lambda i, j: (i, 0)),
            scratch_shapes=[pltpu.VMEM((tn, 1), jnp.float32),   # running max m
                            pltpu.VMEM((tn, 1), jnp.float32)],  # running sum  l
        ),
        compiler_params=pltpu.CompilerParams(
            dimension_semantics=("parallel", "arbitrary"),
            vmem_limit_bytes=vmem_limit),
    )(logits)

    lse = lse_padded[:n, 0]                                   # drop padded rows

    # Tiny gather (N elements) done in XLA instead of per-element in-kernel work.
    label_logit = jnp.take_along_axis(
        logits, labels.astype(jnp.int32)[:, None], axis=-1)[:, 0].astype(jnp.float32)

    return (jnp.sum(lse - label_logit) * (1.0 / n)).astype(jnp.float32)


# --------------------------------------------------------------------------- #
# Module-style wrapper mirroring dpn.criterions.CrossEntropy.
# --------------------------------------------------------------------------- #
class CrossEntropy:
    """forward(net_output, labels) -> scalar mean cross-entropy loss."""

    @classmethod
    def build(cls, args):
        return cls()

    def __call__(self, net_output, labels, **kwargs):
        return cross_entropy(net_output["logits"], labels)

    forward = __call__


# --------------------------------------------------------------------------- #
# Demo / self-check.
# --------------------------------------------------------------------------- #
if __name__ == "__main__":
    key = jax.random.PRNGKey(0)
    k1, k2, k3, k4 = jax.random.split(key, 4)

    crit = CrossEntropy()

    def ref_loss(logits, labels):
        return -jnp.mean(
            jnp.take_along_axis(
                jax.nn.log_softmax(logits.astype(jnp.float32), axis=-1),
                labels[:, None], axis=-1))

    # Case 1: forced tc=128 -> multi class tiles with a partial last tile
    # (mask path) + partial last row tile (N=24 -> tn=16, grid rows = 2).
    N1, C1 = 24, 160
    logits1 = jax.random.normal(k1, (N1, C1), jnp.float32).astype(jnp.bfloat16)
    labels1 = jax.random.randint(k2, (N1,), 0, C1, dtype=jnp.int32)
    loss1 = cross_entropy(logits1, labels1, tc=128)
    jax.block_until_ready(loss1)
    assert jnp.allclose(loss1, ref_loss(logits1, labels1), atol=1e-4, rtol=1e-4), \
        (loss1, ref_loss(logits1, labels1))

    # Case 2: C % tc == 0 -> static no-mask fast path, multi class tiles.
    N2, C2 = 40, 256
    logits2 = jax.random.normal(k3, (N2, C2), jnp.float32).astype(jnp.bfloat16)
    labels2 = jax.random.randint(k4, (N2,), 0, C2, dtype=jnp.int32)
    loss2 = cross_entropy(logits2, labels2, tc=128)
    jax.block_until_ready(loss2)
    assert jnp.allclose(loss2, ref_loss(logits2, labels2), atol=1e-4, rtol=1e-4), \
        (loss2, ref_loss(logits2, labels2))

    # Case 3: default tiling (single full-width class tile), via the module API.
    loss3 = crit({"logits": logits1}, labels1)
    jax.block_until_ready(loss3)
    assert jnp.allclose(loss3, ref_loss(logits1, labels1), atol=1e-4, rtol=1e-4), \
        (loss3, ref_loss(logits1, labels1))

    print("KERNEL_OK")
</pallas_src>

<mosaic_0001>
module attributes {stable_mosaic.version = 11 : i64} {
  func.func @_lse_kernel(%arg0: i32, %arg1: i32, %arg2: memref<16x128xbf16, #tpu.memory_space<vmem>>, %arg3: memref<16x1xf32, #tpu.memory_space<vmem>>, %arg4: memref<16x1xf32, #tpu.memory_space<vmem>>, %arg5: memref<16x1xf32, #tpu.memory_space<vmem>>) attributes {dimension_semantics = [#tpu.dimension_semantics<parallel>, #tpu.dimension_semantics<arbitrary>], iteration_bounds = array<i64: 2, 2>, scalar_prefetch = 0 : i64, scratch_operands = 2 : i64, tpu.core_type = #tpu.core_type<tc>, window_params = [{transform_indices = @transform_0, window_bounds = array<i64: 16, 128>}, {transform_indices = @transform_1, window_bounds = array<i64: 16, 1>}]} {
    %c0_i32 = arith.constant 0 : i32
    %0 = arith.cmpi eq, %arg1, %c0_i32 : i32
    %1 = arith.extui %0 : i1 to i32
    %c0_i32_0 = arith.constant 0 : i32
    %2 = arith.cmpi ne, %1, %c0_i32_0 : i32
    scf.if %2 {
      %cst_15 = arith.constant 0xFF800000 : f32
      %40 = vector.broadcast %cst_15 : f32 to vector<16x1xf32>
      %c0_16 = arith.constant 0 : index
      %c0_17 = arith.constant 0 : index
      %41 = vector.load %arg4[%c0_16, %c0_17] : memref<16x1xf32, #tpu.memory_space<vmem>>, vector<16x1xf32>
      tpu.vector_store %arg4[%c0_16, %c0_17], %40 {strides = array<i32>} : memref<16x1xf32, #tpu.memory_space<vmem>>, vector<16x1xf32>,
      %cst_18 = arith.constant 0.000000e+00 : f32
      %42 = vector.broadcast %cst_18 : f32 to vector<16x1xf32>
      %c0_19 = arith.constant 0 : index
      %c0_20 = arith.constant 0 : index
      %43 = vector.load %arg5[%c0_19, %c0_20] : memref<16x1xf32, #tpu.memory_space<vmem>>, vector<16x1xf32>
      tpu.vector_store %arg5[%c0_19, %c0_20], %42 {strides = array<i32>} : memref<16x1xf32, #tpu.memory_space<vmem>>, vector<16x1xf32>,
    } else {
    }
    %c0 = arith.constant 0 : index
    %c0_1 = arith.constant 0 : index
    %3 = vector.load %arg2[%c0, %c0_1] : memref<16x128xbf16, #tpu.memory_space<vmem>>, vector<16x128xbf16>
    %c128_i32 = arith.constant 128 : i32
    %4 = arith.muli %arg1, %c128_i32 : i32
    %5 = tpu.iota {dimensions = array<i32: 1>} : vector<1x128xi32>
    %6 = vector.broadcast %4 : i32 to vector<1x128xi32>
    %7 = arith.addi %6, %5 : vector<1x128xi32>
    %c160_i32 = arith.constant 160 : i32
    %8 = vector.broadcast %c160_i32 : i32 to vector<1x128xi32>
    %9 = arith.cmpi slt, %7, %8 : vector<1x128xi32>
    %cst = arith.constant 0xFF800000 : f32
    %10 = arith.truncf %cst : f32 to bf16
    %11 = vector.shape_cast %9 : vector<1x128xi1> to vector<1x128xi1>
    %12 = vector.broadcast %11 : vector<1x128xi1> to vector<16x128xi1>
    %13 = vector.broadcast %10 : bf16 to vector<16x128xbf16>
    %14 = arith.select %12, %3, %13 : vector<16x128xi1>, vector<16x128xbf16>
    %cst_2 = arith.constant dense<0xFF80> : vector<16xbf16>
    %15 = vector.multi_reduction <maximumf>, %14, %cst_2 [1] : vector<16x128xbf16> to vector<16xbf16>
    %16 = vector.shape_cast %15 : vector<16xbf16> to vector<16x1xbf16>
    %17 = arith.extf %16 : vector<16x1xbf16> to vector<16x1xf32>
    %c0_3 = arith.constant 0 : index
    %c0_4 = arith.constant 0 : index
    %18 = vector.load %arg4[%c0_3, %c0_4] : memref<16x1xf32, #tpu.memory_space<vmem>>, vector<16x1xf32>
    %19 = arith.maximumf %18, %17 : vector<16x1xf32>
    %20 = arith.subf %18, %19 : vector<16x1xf32>
    %21 = math.exp %20 : vector<16x1xf32>
    %cst_5 = arith.constant 0xFF800000 : f32
    %22 = vector.broadcast %cst_5 : f32 to vector<16x1xf32>
    %23 = arith.cmpf oeq, %19, %22 : vector<16x1xf32>
    %cst_6 = arith.constant 0.000000e+00 : f32
    %24 = vector.broadcast %cst_6 : f32 to vector<16x1xf32>
    %25 = arith.select %23, %24, %21 : vector<16x1xi1>, vector<16x1xf32>
    %26 = arith.extf %14 : vector<16x128xbf16> to vector<16x128xf32>
    %27 = vector.broadcast %19 : vector<16x1xf32> to vector<16x128xf32>
    %28 = arith.subf %26, %27 : vector<16x128xf32>
    %29 = math.exp %28 : vector<16x128xf32>
    %c0_7 = arith.constant 0 : index
    %c0_8 = arith.constant 0 : index
    %30 = vector.load %arg5[%c0_7, %c0_8] : memref<16x1xf32, #tpu.memory_space<vmem>>, vector<16x1xf32>
    %31 = arith.mulf %25, %30 : vector<16x1xf32>
    %cst_9 = arith.constant dense<0.000000e+00> : vector<16xf32>
    %32 = vector.multi_reduction <add>, %29, %cst_9 [1] : vector<16x128xf32> to vector<16xf32>
    %33 = vector.shape_cast %32 : vector<16xf32> to vector<16x1xf32>
    %34 = arith.addf %31, %33 : vector<16x1xf32>
    %c0_10 = arith.constant 0 : index
    %c0_11 = arith.constant 0 : index
    %35 = vector.load %arg5[%c0_10, %c0_11] : memref<16x1xf32, #tpu.memory_space<vmem>>, vector<16x1xf32>
    tpu.vector_store %arg5[%c0_10, %c0_11], %34 {strides = array<i32>} : memref<16x1xf32, #tpu.memory_space<vmem>>, vector<16x1xf32>,
    %c0_12 = arith.constant 0 : index
    %c0_13 = arith.constant 0 : index
    %36 = vector.load %arg4[%c0_12, %c0_13] : memref<16x1xf32, #tpu.memory_space<vmem>>, vector<16x1xf32>
    tpu.vector_store %arg4[%c0_12, %c0_13], %19 {strides = array<i32>} : memref<16x1xf32, #tpu.memory_space<vmem>>, vector<16x1xf32>,
    %c1_i32 = arith.constant 1 : i32
    %37 = arith.cmpi eq, %arg1, %c1_i32 : i32
    %38 = arith.extui %37 : i1 to i32
    %c0_i32_14 = arith.constant 0 : i32
    %39 = arith.cmpi ne, %38, %c0_i32_14 : i32
    scf.if %39 {
      %c0_15 = arith.constant 0 : index
      %c0_16 = arith.constant 0 : index
      %40 = vector.load %arg4[%c0_15, %c0_16] : memref<16x1xf32, #tpu.memory_space<vmem>>, vector<16x1xf32>
      %c0_17 = arith.constant 0 : index
      %c0_18 = arith.constant 0 : index
      %41 = vector.load %arg5[%c0_17, %c0_18] : memref<16x1xf32, #tpu.memory_space<vmem>>, vector<16x1xf32>
      %42 = math.log %41 : vector<16x1xf32>
      %43 = arith.addf %40, %42 : vector<16x1xf32>
      %c0_19 = arith.constant 0 : index
      %c0_20 = arith.constant 0 : index
      %44 = vector.load %arg3[%c0_19, %c0_20] : memref<16x1xf32, #tpu.memory_space<vmem>>, vector<16x1xf32>
      tpu.vector_store %arg3[%c0_19, %c0_20], %43 {strides = array<i32>} : memref<16x1xf32, #tpu.memory_space<vmem>>, vector<16x1xf32>,
    } else {
    }
    return
  }
  func.func @transform_0(%arg0: i32, %arg1: i32) -> (i32, i32) {
    %c0_i32 = arith.constant 0 : i32
    return %arg0, %arg1 : i32, i32
  }
  func.func @transform_1(%arg0: i32, %arg1: i32) -> (i32, i32) {
    %c0_i32 = arith.constant 0 : i32
    %c0_i32_0 = arith.constant 0 : i32
    return %arg0, %c0_i32 : i32, i32
  }
}

</mosaic_0001>

<bundles_post_ra>
// kernel: tpu_custom_call.1
= control target key start
LH: loop header
LB: loop body
LE: loop exit
PB: predicated region body
PF: predicated region fallthrough
CT: control target
= control target key end

     0   :  { %6 = vsyncpa [#allocation5], 0  ;;  %s717_s0 = inlined_call_operand.hbm [shape: bf16[24,160], index: 0, kind: input, shape index: {}]   ;;  %s718_s1 = inlined_call_operand.vmem [shape: f32[32,1], index: 1, kind: output, shape index: {}]  }
   0x1   :  { %8 = vsyncpa [#allocation5 + $0x1], 0  ;;  %s563_s6 = smov 0   ;;  %s565_s7 = smov 0  }
   0x2   :  { %s567_s8 = smov 0   ;;  %s569_s9 = smov 0  }
   0x3   :  { %s571_s10 = smov 0   ;;  %s573_s11 = smov 0  }
   0x4   :  { %s575_s12 = smov 0   ;;  %s577_s13 = smov 0  }
   0x5 LB: > { %s23_s14 = sadd.s32 1, %s536_s11  ;;  %s26_s15 = sadd.s32 1, %s540_s12  ;;  %s544_s13 = sphi %s577_s13, %s14_s13   ;;  %s540_s12 = sphi %s575_s12, %s726_s12   ;;  %s536_s11 = sphi %s573_s11, %s725_s11   ;;  %s532_s10 = sphi %s571_s10, %s724_s10   ;;  %s528_s9 = sphi %s569_s9, %s723_s9   ;;  %s524_s8 = sphi %s567_s8, %s722_s8   ;;  %s520_s7 = sphi %s565_s7, %s721_s7   ;;  %s516_s6 = sphi %s563_s6, %s720_s6  }
   0x6   : > { %p24_p0 = scmp.ge.s32.totalorder %s23_s14, 2  ;;  %s342_s16 = sadd.s32 4294967295, %s544_s13  }
   0x7   : > { %p42_p1 = scmp.ne.s32.totalorder %s524_s8, %s520_s7  ;;  %p43_p2 = scmp.eq.s32.totalorder %s544_s13, 0 }
   0x8   : > { %s728_s14 = smov (%p24_p0, %s23_s14), 0  ;;  %s730_s15 = smov (!%p24_p0, %s26_s15), %s540_s12 }
   0x9   : > { %s31_s17 = ssub.s32 %s536_s11, %s728_s14  ;;  %p28_p3 = scmp.ge.s32.totalorder %s730_s15, 2 }
   0xa   : > { %p48_p4 = scmp.ne.s32.totalorder %s520_s7, %s516_s6  ;;  %p44_p5 = por %p43_p2, %p42_p1 }
   0xb   : > { %p49_p6 = scmp.eq.s32.totalorder %s342_s16, 0  ;;  %s732_s15 = smov (%p28_p3, %s730_s15), 0 }
   0xc   : > { %s30_s19 = ssub.s32 %s540_s12, %s732_s15  ;;  %s35_s21 = sadd.s32 1, %s524_s8 }
   0xd   : > { %p615_p7 = por %p49_p6, %p48_p4  ;;  %s32_s20 = sor.u32 %s31_s17, %s30_s19 }
   0xe   : > { %p33_p8 = scmp.eq.s32.totalorder %s32_s20, 0  ;;  %p345_p9 = scmp.ge.s32.totalorder %s544_s13, 4 }
  0x10   : > { %s623_s22 = scalar_select %p33_p8, %s524_s8, %s35_s21  }
  0x11   : > { %94 = sbr.rel (%p345_p9) target bundleno = 61 (0x3d), region = 16 }
  0x18   : > { %97 = sbr.rel (!%p44_p5) target bundleno = 61 (0x3d), region = 20  ;;  %s98_s23 = sand.u32 (%p44_p5), 1, %s524_s8  }
  0x19   : > { %s347_s24 = sshll.u32 (%p44_p5), %s540_s12, 1  ;;  %s346_s25 = sshll.u32 (%p44_p5), %s98_s23, 3 }
  0x1a   : > { %s104_s26 = ssub.s32 (%p44_p5), 3, %s347_s24  ;;  %s631_s29 = scalar_lea.sflag (%p44_p5), [#allocation5], %s98_s23 }
  0x1b   : > { %p105_p10 = scmp.lt.s32.totalorder (%p44_p5), %s104_s26, 2  ;;  %s102_s30 = scalar_lea.vmem (%p44_p5), [#allocation4], %s346_s25 }
  0x1f   : > { %s734_s26 = smov (!%p105_p10, %s104_s26), 2 }
  0x20   : > { %s628_s27 = sshll.u32 %s734_s26, 6 }
  0x21   : > { %s109_s28 = ssub.s32 128, %s628_s27 }
  0x22   : > { %110 = vsyncadd %s631_s29, %s109_s28  ;;  %p349_p11 = scmp.ne.s32.totalorder %s628_s27, 0  ;;  %s364_s2 = sshll.u32 %s540_s12, 2 }
  0x23   : > { %s113_s3 = sadd.s32 %s536_s11, %s364_s2  ;;  %s117_s4 = sshll.u32 %s102_s30, 4  ;;  %s637_s4 = int_to_ptr.vmem [resolvable:$true] %s117_s4 }
  0x24   : > { %s351_s5 = sshll.u32 %s113_s3, 6  ;;  %s454_s23 = scalar_lea.hbm %s717_s0, 384 }
  0x25   : > { %s642_s17 = scalar_lea.hbm %s717_s0, %s351_s5 }
  0x26   : > { %s450_s19 = scalar_lea.hbm %s642_s17, %s628_s27  ;;  %p455_p1 = scmp.lt.u32.totalorder %s642_s17, %s717_s0 }
  0x27   : > { %p451_p12 = scmp.ne.s32.totalorder %s642_s17, %s450_s19  ;;  %p456_p2 = scmp.lt.u32.totalorder %s454_s23, %s450_s19 }
  0x28   : > { %p458_p4 = scmp.lt.u32.totalorder %s450_s19, %s642_s17 }
  0x29   : > { %p452_p13 = pnand %p451_p12, %p349_p11  ;;  %p457_p3 = por %p456_p2, %p455_p1 }
  0x2b   : > { %p453_p0 = pneg %p452_p13  ;;  %p459_p5 = por %p458_p4, %p457_p3 }
  0x2d   : > { %p460_p6 = pnand %p459_p5, %p453_p0 }
  0x2f   : > { %463 = shalt.err (!%p460_p6)
}
  0x30   : > { %s464_s26 = scalar_lea.vmem %s637_s4, %s628_s27  ;;  %s546_s28 = smov [#allocation4]  }
  0x31   : > { %p465_p8 = scmp.ne.s32.totalorder %s637_s4, %s464_s26  ;;  %s468_s30 = sshll.u32 %s546_s28, 4  ;;  %s469_s30 = int_to_ptr.vmem [resolvable:$false] %s468_s30 }
  0x32   : > { %s470_s2 = scalar_lea.vmem %s469_s30, 256  ;;  %p471_p12 = scmp.lt.s32.totalorder %s637_s4, %s469_s30 }
  0x33   : > { %p466_p9 = pnand %p465_p8, %p349_p11  ;;  %p472_p13 = scmp.lt.s32.totalorder %s470_s2, %s464_s26 }
  0x35   : > { %p467_p10 = pneg %p466_p9  ;;  %p473_p1 = por %p472_p13, %p471_p12 }
  0x37   : > { %p474_p2 = pnand %p473_p1, %p467_p10 }
  0x39   : > { %477 = shalt.err (!%p474_p2)
}
  0x3a   : > { %s547_s3 = smov 128   ;;  %s548_s5 = smov 64  }
  0x3b   : > { %s549_s6 = smov 4  }
  0x3c   : > { %123 = dma.hbm_to_vmem [thread:$0]  (%p349_p11), %s642_s17, %s628_s27, %s637_s4, %s631_s29, %s547_s3, %s548_s5, %s549_s6  }
  0x3d PF: > { %p354_p0 = scmp.ge.s32.totalorder %s544_s13, 1  ;;  %p125_p3 = scmp.lt.s32.totalorder %s544_s13, 5 }
  0x3f   : > { %p126_p4 = pnand %p354_p0, %p125_p3 }
  0x40   : > { %s131_s16 = sand.u32 (!%p126_p4), 1, %s520_s7  }
  0x41   : > { %129 = sbr.rel (%p126_p4) target bundleno = 558 (0x22e), region = 24  ;;  %s355_s19 = sshll.u32 (!%p126_p4), %s131_s16, 3 }
  0x42   : > { %s132_s20 = scalar_lea.sflag (!%p126_p4), [#allocation5], %s131_s16  ;;  %s135_s21 = scalar_lea.vmem (!%p126_p4), [#allocation4], %s355_s19 }
  0x48   : > { %511 = dma.done.wait (%p615_p7), %s132_s20, 128  }
  0x49   : > { %513 = vsyncadd (%p615_p7), %s132_s20, 4294967168  ;;  %s356_s27 = sshll.u32 %s532_s10, 1  ;;  %p358_p5 = scmp.ne.s32.totalorder %s528_s9, 0 }
  0x4a   : > { %p160_p11 = scmp.lt.s32.totalorder %s356_s27, 3  ;;  %vm170_vm0 = vcmask (!%p358_p5), 7168   ;;  %v550_v0 = vmov (!%p358_p5), -inf   ;;  %v551_v1 = vmov (!%p358_p5), 0.0  }
  0x4b   : > { %169 = sbr.rel (%p358_p5) target bundleno = 82 (0x52), region = 32  ;;  %171 = vst.msk [vmem:[#allocation2] sm:$0xff] (!%p358_p5), %vm170_vm0, %v550_v0  ;;  %172 = vst.msk [vmem:[#allocation2 + $0x8] sm:$0xff] (!%p358_p5), %vm170_vm0, %v550_v0 }
  0x4c   : > { %s736_s27 = smov (!%p160_p11, %s356_s27), 3  ;;  %173 = vst.msk [vmem:[#allocation3] sm:$0xff] (!%p358_p5), %vm170_vm0, %v551_v1  ;;  %174 = vst.msk [vmem:[#allocation3 + $0x8] sm:$0xff] (!%p358_p5), %vm170_vm0, %v551_v1 }
  0x4d   : > { %s357_s29 = sshll.u32 %s736_s27, 3 }
  0x4e   : > { %s680_s23 = scalar_lea.vmem %s718_s1, %s357_s29 }
  0x52 PF: > { %s359_s10 = sshll.u32 %s528_s9, 7  ;;  %v178_v2 = vlaneseq  ;;  %v175_v6 = vld [vmem:[%s135_s21] sm:$0xf]  ;;  %v176_v7 = vld [vmem:[%s135_s21 + $0x4] sm:$0xf]  ;;  %v552_v11 = vmov 0  }
  0x53   : > { %v180_v3 = vstv %s359_s10  ;;  %437 = vset.pattern.permute.xlu1 %v552_v11  ;;  %436 = vset.pattern.permute.xlu0 %v552_v11  ;;  %v198_v12 = vld [vmem:[#allocation2] sm:$0xff]  ;;  %v199_v13 = vld [vmem:[#allocation2 + $0x8] sm:$0xff]  ;;  %vm240_vm3 = vcmask 7168   ;;  %v230_v37 = vld [vmem:[#allocation3] sm:$0xff]  ;;  %p361_p7 = scmp.ne.s32.totalorder %s528_s9, 1 }
  0x54   : > { %v179_v4 = vand.u32 127, %v178_v2  ;;  %v231_v40 = vld [vmem:[#allocation3 + $0x8] sm:$0xff] }
  0x56   : > { %v181_v5 = vadd.s32 %v180_v3, %v179_v4 }
  0x58   : > { %vm182_vm1 = vcmp.lt.s32.totalorder %v181_v5, 160 }
  0x59   : > { %vm185_vm2 = vmpackc.low %vm182_vm1, %vm182_vm1 }
  0x5a   : > { %v186_v8 = vsel %vm185_vm2, %v175_v6, 4286644096  ;;  %v187_v9 = vsel %vm185_vm2, %v176_v7, 4286644096 }
  0x5b   : > { %v360_v10 = vcombine.low %v186_v8, %v187_v9  ;;  %v212_v27 = vunpack.c.l.bf16 %v186_v8  ;;  %v213_v28 = vunpack.c.l.bf16 %v187_v9 }
  0x5d   : > { %194 = vmax.xlane.bf16.xlu0 %v360_v10 }
  0xee   : > { %v195_v14 = vpop.xlane.xlu0 %194 }
  0xef   : > { %v196_v15 = vunpack.c.l.bf16 %v195_v14  ;;  %v197_v16 = vunpack.c.h.bf16 %v195_v14 }
  0xf1   : > { %v200_v17 = vmax.f32 %v198_v12, %v196_v15  ;;  %v201_v18 = vmax.f32 %v199_v13, %v197_v16 }
  0xf3   : > { %v202_v19 = vsub.f32 %v198_v12, %v200_v17  ;;  %v203_v20 = vsub.f32 %v199_v13, %v201_v18  ;;  %243 = vst.msk [vmem:[#allocation2] sm:$0xff] %vm240_vm3, %v200_v17  ;;  %244 = vst.msk [vmem:[#allocation2 + $0x8] sm:$0xff] %vm240_vm3, %v201_v18  ;;  %221 = vperm.xlu1 %437, %v201_v18   ;;  %216 = vperm.xlu0 %436, %v200_v17   ;;  %vm208_vm4 = vcmp.eq.f32.partialorder %v200_v17, -inf }
  0xf4   : > { %vm209_vm5 = vcmp.eq.f32.partialorder %v201_v18, -inf }
  0xf5   : > { %v204_v21 = vmul.f32 1.442695, %v202_v19  ;;  %v206_v22 = vmul.f32 1.442695, %v203_v20 }
  0xf7   : > { %438 = vpow2.f32 %v204_v21 }
  0xf8   : > { %440 = vpow2.f32 %v206_v22 }
  0xfa   : > { %v249_v48 = vld [vmem:[#allocation2] sm:$0xff] (!%p361_p7)  ;;  %v250_v51 = vld [vmem:[#allocation2 + $0x8] sm:$0xff] (!%p361_p7) }
 0x101   : > { %v439_v23 = vpop.eup %438 }
 0x102   : > { %v441_v24 = vpop.eup %440  ;;  %v210_v25 = vsel %vm208_vm4, 0.0, %v439_v23 }
 0x103   : > { %v211_v26 = vsel %vm209_vm5, 0.0, %v441_v24  ;;  %v232_v38 = vmul.f32 %v230_v37, %v210_v25 }
 0x104   : > { %v233_v42 = vmul.f32 %v231_v40, %v211_v26 }
 0x172   : > { %v222_v29 = vpop.permute.xlu1 %221  ;;  %v217_v30 = vpop.permute.xlu0 %216 }
 0x173   : > { %v224_v31 = vsub.f32 %v212_v27, %v217_v30  ;;  %v225_v32 = vsub.f32 %v213_v28, %v222_v29 }
 0x175   : > { %v226_v33 = vmul.f32 1.442695, %v224_v31  ;;  %v228_v34 = vmul.f32 1.442695, %v225_v32 }
 0x177   : > { %442 = vpow2.f32 %v226_v33 }
 0x178   : > { %444 = vpow2.f32 %v228_v34 }
 0x181   : > { %v443_v35 = vpop.eup %442 }
 0x182   : > { %234 = vadd.xlane.f32.xlu1 %v443_v35  ;;  %v445_v36 = vpop.eup %444 }
 0x186   : > { %236 = vadd.xlane.f32.xlu1 %v445_v36 }
 0x20f   : > { %v235_v39 = vpop.xlane.xlu1 %234 }
 0x210   : > { %v238_v41 = vadd.f32 %v235_v39, %v232_v38  ;;  %248 = sbr.rel (%p361_p7) target bundleno = 558 (0x22e), region = 36 }
 0x212   : > { %241 = vst.msk [vmem:[#allocation3] sm:$0xff] %vm240_vm3, %v238_v41 }
 0x213   : > { %v237_v43 = vpop.xlane.xlu1 %236 }
 0x214   : > { %v239_v44 = vadd.f32 %v237_v43, %v233_v42 }
 0x216   : > { %242 = vst.msk [vmem:[#allocation3 + $0x8] sm:$0xff] %vm240_vm3, %v239_v44 }
 0x219   : > { %v251_v45 = vld [vmem:[#allocation3] sm:$0xff] }
 0x21a   : > { %446 = vlog2.f32 %v251_v45 }
 0x21d   : > { %v252_v46 = vld [vmem:[#allocation3 + $0x8] sm:$0xff] }
 0x21e   : > { %448 = vlog2.f32 %v252_v46 }
 0x224   : > { %v447_v47 = vpop.eup %446 }
 0x225   : > { %v254_v50 = vmul.f32 0.6931472, %v447_v47 }
 0x227   : > { %v257_v53 = vadd.f32 %v254_v50, %v249_v48 }
 0x228   : > { %v449_v49 = vpop.eup %448 }
 0x229   : > { %v256_v52 = vmul.f32 0.6931472, %v449_v49  ;;  %259 = vst.msk [vmem:[%s680_s23] sm:$0xff] %vm240_vm3, %v257_v53 }
 0x22b   : > { %v258_v54 = vadd.f32 %v256_v52, %v250_v51 }
 0x22d   : > { %260 = vst.msk [vmem:[%s680_s23 + $0x8] sm:$0xff] %vm240_vm3, %v258_v54 }
 0x22e PF: > { %s14_s13 = sadd.s32 1, %s544_s13   ;;  %s720_s6 = smov %s520_s7 }
 0x22f   : > { %p11_p6 = scmp.ge.s32.totalorder %s14_s13, 6   ;;  %s721_s7 = smov %s524_s8 }
 0x230   : > { %s722_s8 = smov %s623_s22  ;;  %s723_s9 = smov %s536_s11 }
 0x231   : > { %s724_s10 = smov %s540_s12  ;;  %s725_s11 = smov %s728_s14 }
 0x232   : > { %s726_s12 = smov %s732_s15  ;;  %13 = sbr.rel (!%p11_p6) target bundleno = 5 (0x5), region = 72 }
 0x239   :  { %283 = vsyncpa [#allocation5], 1 }
 0x23a   :  { %285 = vsyncpa [#allocation5 + $0x1], 1 }

</bundles_post_ra>
